<compile_context>
chip_gen: v6e
topology: v6e:2x2x1
jax: 0.10.0
libtpu: 0.0.40
codegen_flags: <defaults>
</compile_context>

<pallas_src>
import jax
import jax.numpy as jnp
from jax.experimental import pallas as pl
from jax.experimental.pallas import tpu as pltpu


def _bottleneck_kernel(x_ref, w1t_ref, s1_ref, t1_ref,
                       w2t_ref, s2_ref, t2_ref,
                       w3t_ref, s3_ref, t3_ref,
                       o_ref):
    # x_ref: (1, L, Cin) channels-last tile for one batch element.
    x = x_ref[0]                                                     # (L, Cin)

    # conv1 (1x1) + folded BN1 + ReLU
    h1 = jnp.dot(x, w1t_ref[...], preferred_element_type=jnp.float32)
    h1 = jnp.maximum(h1 * s1_ref[...] + t1_ref[...], 0.0)           # (L, P)

    # conv2 (k=3, padding=1) as three shifted matmuls + folded BN2 + ReLU
    L, P = h1.shape
    zero_row = jnp.zeros((1, P), dtype=h1.dtype)
    h_left = jnp.concatenate([zero_row, h1[:-1, :]], axis=0)        # h1[l-1]
    h_right = jnp.concatenate([h1[1:, :], zero_row], axis=0)        # h1[l+1]
    y2 = jnp.dot(h_left, w2t_ref[0], preferred_element_type=jnp.float32)
    y2 += jnp.dot(h1, w2t_ref[1], preferred_element_type=jnp.float32)
    y2 += jnp.dot(h_right, w2t_ref[2], preferred_element_type=jnp.float32)
    h2 = jnp.maximum(y2 * s2_ref[...] + t2_ref[...], 0.0)           # (L, P)

    # conv3 (1x1) + folded BN3
    y3 = jnp.dot(h2, w3t_ref[...], preferred_element_type=jnp.float32)
    y3 = y3 * s3_ref[...] + t3_ref[...]                             # (L, 4P)

    # identity residual + final ReLU
    o_ref[0] = jnp.maximum(y3 + x, 0.0).astype(o_ref.dtype)


def _bn_fold(gamma, beta, mean, var, eps=1e-5):
    scale = gamma * jax.lax.rsqrt(var + eps)
    shift = beta - mean * scale
    return scale, shift


def bottleneck_forward(x, p, *, eps=1e-5):
    """Bottleneck forward pass (stride=1, downsample=None, eval-mode BN).

    Args:
      x: (B, C_in, L) float32, PyTorch Conv1d layout.
      p: dict with conv weights (PyTorch layouts) and BN parameters/stats:
         w1 (P, C_in, 1), w2 (P, P, 3), w3 (4P, P, 1),
         g*/b*/m*/v* = BN gamma/beta/running_mean/running_var per stage.
    Returns:
      (B, 4P, L) float32.
    """
    B, Cin, L = x.shape
    P = p["w1"].shape[0]
    Cout = p["w3"].shape[0]
    assert Cout == Cin, "identity residual requires inplanes == planes * expansion"

    # channels-last so the convs are (tokens x channels) MXU matmuls
    x_cl = jnp.transpose(x, (0, 2, 1))                   # (B, L, Cin)

    # tiny per-layer weights: transpose once per call (negligible bytes)
    w1t = jnp.transpose(p["w1"][:, :, 0])                # (Cin, P)
    w2t = jnp.transpose(p["w2"], (2, 1, 0))              # (3, P_in, P_out)
    w3t = jnp.transpose(p["w3"][:, :, 0])                # (P, Cout)

    s1, t1 = _bn_fold(p["g1"], p["b1"], p["m1"], p["v1"], eps)
    s2, t2 = _bn_fold(p["g2"], p["b2"], p["m2"], p["v2"], eps)
    s3, t3 = _bn_fold(p["g3"], p["b3"], p["m3"], p["v3"], eps)
    s1 = s1.reshape(1, P); t1 = t1.reshape(1, P)
    s2 = s2.reshape(1, P); t2 = t2.reshape(1, P)
    s3 = s3.reshape(1, Cout); t3 = t3.reshape(1, Cout)

    out_cl = pl.pallas_call(
        _bottleneck_kernel,
        out_shape=jax.ShapeDtypeStruct((B, L, Cout), x.dtype),
        grid_spec=pltpu.PrefetchScalarGridSpec(
            num_scalar_prefetch=0,
            grid=(B,),
            in_specs=[
                pl.BlockSpec((1, L, Cin), lambda b: (b, 0, 0)),   # x tile
                pl.BlockSpec((Cin, P), lambda b: (0, 0)),         # W1^T
                pl.BlockSpec((1, P), lambda b: (0, 0)),           # BN1 scale
                pl.BlockSpec((1, P), lambda b: (0, 0)),           # BN1 shift
                pl.BlockSpec((3, P, P), lambda b: (0, 0, 0)),     # W2 taps^T
                pl.BlockSpec((1, P), lambda b: (0, 0)),           # BN2 scale
                pl.BlockSpec((1, P), lambda b: (0, 0)),           # BN2 shift
                pl.BlockSpec((P, Cout), lambda b: (0, 0)),        # W3^T
                pl.BlockSpec((1, Cout), lambda b: (0, 0)),        # BN3 scale
                pl.BlockSpec((1, Cout), lambda b: (0, 0)),        # BN3 shift
            ],
            out_specs=pl.BlockSpec((1, L, Cout), lambda b: (b, 0, 0)),
        ),
        compiler_params=pltpu.CompilerParams(
            dimension_semantics=("parallel",)),
    )(x_cl, w1t, s1, t1, w2t, s2, t2, w3t, s3, t3)

    return jnp.transpose(out_cl, (0, 2, 1))              # back to (B, Cout, L)


def _reference(x, p, eps=1e-5):
    """Plain-JAX reference matching the PyTorch module (eval-mode BN)."""
    def bn(h, g, b_, m, v):
        s = g * jax.lax.rsqrt(v + eps)
        return (h - m[None, :, None]) * s[None, :, None] + b_[None, :, None]

    B, C, L = x.shape
    h = jnp.einsum('bcl,pc->bpl', x, p["w1"][:, :, 0])
    h = jax.nn.relu(bn(h, p["g1"], p["b1"], p["m1"], p["v1"]))
    hp = jnp.pad(h, ((0, 0), (0, 0), (1, 1)))
    h2 = sum(jnp.einsum('bcl,pc->bpl', hp[:, :, k:k + L], p["w2"][:, :, k])
             for k in range(3))
    h2 = jax.nn.relu(bn(h2, p["g2"], p["b2"], p["m2"], p["v2"]))
    h3 = jnp.einsum('bcl,pc->bpl', h2, p["w3"][:, :, 0])
    h3 = bn(h3, p["g3"], p["b3"], p["m3"], p["v3"])
    return jax.nn.relu(h3 + x)


if __name__ == "__main__":
    key = jax.random.PRNGKey(0)
    ks = jax.random.split(key, 16)

    B, L = 2, 16
    planes = 4
    inplanes = planes * 4        # expansion = 4 -> identity residual is valid

    x = jax.random.normal(ks[0], (B, inplanes, L), jnp.float32)

    def u(k, shape, lo, hi):
        return jax.random.uniform(k, shape, jnp.float32, lo, hi)

    p = {
        "w1": jax.random.normal(ks[1], (planes, inplanes, 1), jnp.float32) * 0.2,
        "w2": jax.random.normal(ks[2], (planes, planes, 3), jnp.float32) * 0.2,
        "w3": jax.random.normal(ks[3], (planes * 4, planes, 1), jnp.float32) * 0.2,
        "g1": u(ks[4], (planes,), 0.5, 1.5),
        "b1": u(ks[5], (planes,), -0.5, 0.5),
        "m1": u(ks[6], (planes,), -0.5, 0.5),
        "v1": u(ks[7], (planes,), 0.5, 1.5),
        "g2": u(ks[8], (planes,), 0.5, 1.5),
        "b2": u(ks[9], (planes,), -0.5, 0.5),
        "m2": u(ks[10], (planes,), -0.5, 0.5),
        "v2": u(ks[11], (planes,), 0.5, 1.5),
        "g3": u(ks[12], (planes * 4,), 0.5, 1.5),
        "b3": u(ks[13], (planes * 4,), -0.5, 0.5),
        "m3": u(ks[14], (planes * 4,), -0.5, 0.5),
        "v3": u(ks[15], (planes * 4,), 0.5, 1.5),
    }

    out = bottleneck_forward(x, p)
    out = jax.block_until_ready(out)

    ref = _reference(x, p)
    assert out.shape == (B, inplanes, L)
    assert jnp.allclose(out, ref, atol=1e-4, rtol=1e-4), "mismatch vs reference"

    print("KERNEL_OK")
</pallas_src>

<mosaic_0001>
module attributes {stable_mosaic.version = 11 : i64} {
  func.func @_bottleneck_kernel(%arg0: i32, %arg1: memref<1x16x16xf32, #tpu.memory_space<vmem>>, %arg2: memref<16x4xf32, #tpu.memory_space<vmem>>, %arg3: memref<1x4xf32, #tpu.memory_space<vmem>>, %arg4: memref<1x4xf32, #tpu.memory_space<vmem>>, %arg5: memref<3x4x4xf32, #tpu.memory_space<vmem>>, %arg6: memref<1x4xf32, #tpu.memory_space<vmem>>, %arg7: memref<1x4xf32, #tpu.memory_space<vmem>>, %arg8: memref<4x16xf32, #tpu.memory_space<vmem>>, %arg9: memref<1x16xf32, #tpu.memory_space<vmem>>, %arg10: memref<1x16xf32, #tpu.memory_space<vmem>>, %arg11: memref<1x16x16xf32, #tpu.memory_space<vmem>>) attributes {dimension_semantics = [#tpu.dimension_semantics<parallel>], iteration_bounds = array<i64: 2>, scalar_prefetch = 0 : i64, scratch_operands = 0 : i64, tpu.core_type = #tpu.core_type<tc>, window_params = [{transform_indices = @transform_0, window_bounds = array<i64: 1, 16, 16>}, {pipeline_mode = #tpu.pipeline_mode<synchronous>, transform_indices = @transform_1, window_bounds = array<i64: 16, 4>}, {pipeline_mode = #tpu.pipeline_mode<synchronous>, transform_indices = @transform_2, window_bounds = array<i64: 1, 4>}, {pipeline_mode = #tpu.pipeline_mode<synchronous>, transform_indices = @transform_3, window_bounds = array<i64: 1, 4>}, {pipeline_mode = #tpu.pipeline_mode<synchronous>, transform_indices = @transform_4, window_bounds = array<i64: 3, 4, 4>}, {pipeline_mode = #tpu.pipeline_mode<synchronous>, transform_indices = @transform_5, window_bounds = array<i64: 1, 4>}, {pipeline_mode = #tpu.pipeline_mode<synchronous>, transform_indices = @transform_6, window_bounds = array<i64: 1, 4>}, {pipeline_mode = #tpu.pipeline_mode<synchronous>, transform_indices = @transform_7, window_bounds = array<i64: 4, 16>}, {pipeline_mode = #tpu.pipeline_mode<synchronous>, transform_indices = @transform_8, window_bounds = array<i64: 1, 16>}, {pipeline_mode = #tpu.pipeline_mode<synchronous>, transform_indices = @transform_9, window_bounds = array<i64: 1, 16>}, {transform_indices = @transform_10, window_bounds = array<i64: 1, 16, 16>}]} {
    %c0 = arith.constant 0 : index
    %c0_0 = arith.constant 0 : index
    %c0_1 = arith.constant 0 : index
    %0 = vector.load %arg1[%c0, %c0_0, %c0_1] : memref<1x16x16xf32, #tpu.memory_space<vmem>>, vector<1x16x16xf32>
    %1 = vector.shape_cast %0 : vector<1x16x16xf32> to vector<16x16xf32>
    %c0_2 = arith.constant 0 : index
    %c0_3 = arith.constant 0 : index
    %2 = vector.load %arg2[%c0_2, %c0_3] : memref<16x4xf32, #tpu.memory_space<vmem>>, vector<16x4xf32>
    %cst = arith.constant dense<0.000000e+00> : vector<16x4xf32>
    %3 = tpu.matmul %1, %2, %cst {dimension_numbers = #tpu.dot_dimension_numbers<[1], [0], [0], [1], [0, 0, 1, 1], [], []>} : vector<16x16xf32>, vector<16x4xf32>, vector<16x4xf32> -> vector<16x4xf32>
    %c0_4 = arith.constant 0 : index
    %c0_5 = arith.constant 0 : index
    %4 = vector.load %arg3[%c0_4, %c0_5] : memref<1x4xf32, #tpu.memory_space<vmem>>, vector<1x4xf32>
    %5 = vector.broadcast %4 : vector<1x4xf32> to vector<16x4xf32>
    %6 = arith.mulf %3, %5 : vector<16x4xf32>
    %c0_6 = arith.constant 0 : index
    %c0_7 = arith.constant 0 : index
    %7 = vector.load %arg4[%c0_6, %c0_7] : memref<1x4xf32, #tpu.memory_space<vmem>>, vector<1x4xf32>
    %8 = vector.broadcast %7 : vector<1x4xf32> to vector<16x4xf32>
    %9 = arith.addf %6, %8 : vector<16x4xf32>
    %cst_8 = arith.constant 0.000000e+00 : f32
    %10 = vector.broadcast %cst_8 : f32 to vector<16x4xf32>
    %11 = arith.maximumf %9, %10 : vector<16x4xf32>
    %cst_9 = arith.constant 0.000000e+00 : f32
    %12 = vector.broadcast %cst_9 : f32 to vector<1x4xf32>
    %13 = vector.extract_strided_slice %11 {offsets = [0, 0], sizes = [15, 4], strides = [1, 1]} : vector<16x4xf32> to vector<15x4xf32>
    %14 = tpu.concatenate %12, %13 in 0 : vector<1x4xf32>, vector<15x4xf32> -> vector<16x4xf32>
    %15 = vector.extract_strided_slice %11 {offsets = [1, 0], sizes = [15, 4], strides = [1, 1]} : vector<16x4xf32> to vector<15x4xf32>
    %16 = tpu.concatenate %15, %12 in 0 : vector<15x4xf32>, vector<1x4xf32> -> vector<16x4xf32>
    %c0_10 = arith.constant 0 : index
    %c0_11 = arith.constant 0 : index
    %c0_12 = arith.constant 0 : index
    %17 = vector.load %arg5[%c0_10, %c0_11, %c0_12] : memref<3x4x4xf32, #tpu.memory_space<vmem>>, vector<1x4x4xf32>
    %18 = vector.shape_cast %17 : vector<1x4x4xf32> to vector<4x4xf32>
    %cst_13 = arith.constant dense<0.000000e+00> : vector<16x4xf32>
    %19 = tpu.matmul %14, %18, %cst_13 {dimension_numbers = #tpu.dot_dimension_numbers<[1], [0], [0], [1], [0, 0, 1, 1], [], []>} : vector<16x4xf32>, vector<4x4xf32>, vector<16x4xf32> -> vector<16x4xf32>
    %c1 = arith.constant 1 : index
    %c0_14 = arith.constant 0 : index
    %c0_15 = arith.constant 0 : index
    %20 = vector.load %arg5[%c1, %c0_14, %c0_15] : memref<3x4x4xf32, #tpu.memory_space<vmem>>, vector<1x4x4xf32>
    %21 = vector.shape_cast %20 : vector<1x4x4xf32> to vector<4x4xf32>
    %cst_16 = arith.constant dense<0.000000e+00> : vector<16x4xf32>
    %22 = tpu.matmul %11, %21, %cst_16 {dimension_numbers = #tpu.dot_dimension_numbers<[1], [0], [0], [1], [0, 0, 1, 1], [], []>} : vector<16x4xf32>, vector<4x4xf32>, vector<16x4xf32> -> vector<16x4xf32>
    %23 = arith.addf %19, %22 : vector<16x4xf32>
    %c2 = arith.constant 2 : index
    %c0_17 = arith.constant 0 : index
    %c0_18 = arith.constant 0 : index
    %24 = vector.load %arg5[%c2, %c0_17, %c0_18] : memref<3x4x4xf32, #tpu.memory_space<vmem>>, vector<1x4x4xf32>
    %25 = vector.shape_cast %24 : vector<1x4x4xf32> to vector<4x4xf32>
    %cst_19 = arith.constant dense<0.000000e+00> : vector<16x4xf32>
    %26 = tpu.matmul %16, %25, %cst_19 {dimension_numbers = #tpu.dot_dimension_numbers<[1], [0], [0], [1], [0, 0, 1, 1], [], []>} : vector<16x4xf32>, vector<4x4xf32>, vector<16x4xf32> -> vector<16x4xf32>
    %27 = arith.addf %23, %26 : vector<16x4xf32>
    %c0_20 = arith.constant 0 : index
    %c0_21 = arith.constant 0 : index
    %28 = vector.load %arg6[%c0_20, %c0_21] : memref<1x4xf32, #tpu.memory_space<vmem>>, vector<1x4xf32>
    %29 = vector.broadcast %28 : vector<1x4xf32> to vector<16x4xf32>
    %30 = arith.mulf %27, %29 : vector<16x4xf32>
    %c0_22 = arith.constant 0 : index
    %c0_23 = arith.constant 0 : index
    %31 = vector.load %arg7[%c0_22, %c0_23] : memref<1x4xf32, #tpu.memory_space<vmem>>, vector<1x4xf32>
    %32 = vector.broadcast %31 : vector<1x4xf32> to vector<16x4xf32>
    %33 = arith.addf %30, %32 : vector<16x4xf32>
    %cst_24 = arith.constant 0.000000e+00 : f32
    %34 = vector.broadcast %cst_24 : f32 to vector<16x4xf32>
    %35 = arith.maximumf %33, %34 : vector<16x4xf32>
    %c0_25 = arith.constant 0 : index
    %c0_26 = arith.constant 0 : index
    %36 = vector.load %arg8[%c0_25, %c0_26] : memref<4x16xf32, #tpu.memory_space<vmem>>, vector<4x16xf32>
    %cst_27 = arith.constant dense<0.000000e+00> : vector<16x16xf32>
    %37 = tpu.matmul %35, %36, %cst_27 {dimension_numbers = #tpu.dot_dimension_numbers<[1], [0], [0], [1], [0, 0, 1, 1], [], []>} : vector<16x4xf32>, vector<4x16xf32>, vector<16x16xf32> -> vector<16x16xf32>
    %c0_28 = arith.constant 0 : index
    %c0_29 = arith.constant 0 : index
    %38 = vector.load %arg9[%c0_28, %c0_29] : memref<1x16xf32, #tpu.memory_space<vmem>>, vector<1x16xf32>
    %39 = vector.broadcast %38 : vector<1x16xf32> to vector<16x16xf32>
    %40 = arith.mulf %37, %39 : vector<16x16xf32>
    %c0_30 = arith.constant 0 : index
    %c0_31 = arith.constant 0 : index
    %41 = vector.load %arg10[%c0_30, %c0_31] : memref<1x16xf32, #tpu.memory_space<vmem>>, vector<1x16xf32>
    %42 = vector.broadcast %41 : vector<1x16xf32> to vector<16x16xf32>
    %43 = arith.addf %40, %42 : vector<16x16xf32>
    %44 = arith.addf %43, %1 : vector<16x16xf32>
    %cst_32 = arith.constant 0.000000e+00 : f32
    %45 = vector.broadcast %cst_32 : f32 to vector<16x16xf32>
    %46 = arith.maximumf %44, %45 : vector<16x16xf32>
    %c0_33 = arith.constant 0 : index
    %c0_34 = arith.constant 0 : index
    %c0_35 = arith.constant 0 : index
    %47 = vector.load %arg11[%c0_33, %c0_34, %c0_35] : memref<1x16x16xf32, #tpu.memory_space<vmem>>, vector<1x16x16xf32>
    %48 = vector.shape_cast %47 : vector<1x16x16xf32> to vector<16x16xf32>
    %49 = vector.shape_cast %46 : vector<16x16xf32> to vector<1x16x16xf32>
    tpu.vector_store %arg11[%c0_33, %c0_34, %c0_35], %49 {strides = array<i32>} : memref<1x16x16xf32, #tpu.memory_space<vmem>>, vector<1x16x16xf32>,
    return
  }
  func.func @transform_0(%arg0: i32) -> (i32, i32, i32) {
    %c0_i32 = arith.constant 0 : i32
    %c0_i32_0 = arith.constant 0 : i32
    %c0_i32_1 = arith.constant 0 : i32
    return %arg0, %c0_i32, %c0_i32_0 : i32, i32, i32
  }
  func.func @transform_1(%arg0: i32) -> (i32, i32) {
    %c0_i32 = arith.constant 0 : i32
    %c0_i32_0 = arith.constant 0 : i32
    %c0_i32_1 = arith.constant 0 : i32
    return %c0_i32, %c0_i32_0 : i32, i32
  }
  func.func @transform_2(%arg0: i32) -> (i32, i32) {
    %c0_i32 = arith.constant 0 : i32
    %c0_i32_0 = arith.constant 0 : i32
    %c0_i32_1 = arith.constant 0 : i32
    return %c0_i32, %c0_i32_0 : i32, i32
  }
  func.func @transform_3(%arg0: i32) -> (i32, i32) {
    %c0_i32 = arith.constant 0 : i32
    %c0_i32_0 = arith.constant 0 : i32
    %c0_i32_1 = arith.constant 0 : i32
    return %c0_i32, %c0_i32_0 : i32, i32
  }
  func.func @transform_4(%arg0: i32) -> (i32, i32, i32) {
    %c0_i32 = arith.constant 0 : i32
    %c0_i32_0 = arith.constant 0 : i32
    %c0_i32_1 = arith.constant 0 : i32
    %c0_i32_2 = arith.constant 0 : i32
    return %c0_i32, %c0_i32_0, %c0_i32_1 : i32, i32, i32
  }
  func.func @transform_5(%arg0: i32) -> (i32, i32) {
    %c0_i32 = arith.constant 0 : i32
    %c0_i32_0 = arith.constant 0 : i32
    %c0_i32_1 = arith.constant 0 : i32
    return %c0_i32, %c0_i32_0 : i32, i32
  }
  func.func @transform_6(%arg0: i32) -> (i32, i32) {
    %c0_i32 = arith.constant 0 : i32
    %c0_i32_0 = arith.constant 0 : i32
    %c0_i32_1 = arith.constant 0 : i32
    return %c0_i32, %c0_i32_0 : i32, i32
  }
  func.func @transform_7(%arg0: i32) -> (i32, i32) {
    %c0_i32 = arith.constant 0 : i32
    %c0_i32_0 = arith.constant 0 : i32
    %c0_i32_1 = arith.constant 0 : i32
    return %c0_i32, %c0_i32_0 : i32, i32
  }
  func.func @transform_8(%arg0: i32) -> (i32, i32) {
    %c0_i32 = arith.constant 0 : i32
    %c0_i32_0 = arith.constant 0 : i32
    %c0_i32_1 = arith.constant 0 : i32
    return %c0_i32, %c0_i32_0 : i32, i32
  }
  func.func @transform_9(%arg0: i32) -> (i32, i32) {
    %c0_i32 = arith.constant 0 : i32
    %c0_i32_0 = arith.constant 0 : i32
    %c0_i32_1 = arith.constant 0 : i32
    return %c0_i32, %c0_i32_0 : i32, i32
  }
  func.func @transform_10(%arg0: i32) -> (i32, i32, i32) {
    %c0_i32 = arith.constant 0 : i32
    %c0_i32_0 = arith.constant 0 : i32
    %c0_i32_1 = arith.constant 0 : i32
    return %arg0, %c0_i32, %c0_i32_0 : i32, i32, i32
  }
}

</mosaic_0001>

<bundles_post_ra>
// kernel: tpu_custom_call.1
= control target key start
LH: loop header
LB: loop body
LE: loop exit
PB: predicated region body
PF: predicated region fallthrough
CT: control target
= control target key end

     0   :  { %15 = vsyncpa [#allocation3], 0  ;;  %s1479_s0 = inlined_call_operand.hbm [shape: f32[2,16,16], index: 0, kind: input, shape index: {}]   ;;  %s1480_s1 = inlined_call_operand.vmem [shape: f32[16,4], index: 1, kind: input, shape index: {}]   ;;  %s1481_s2 = inlined_call_operand.vmem [shape: f32[1,4], index: 2, kind: input, shape index: {}]   ;;  %s1482_s3 = inlined_call_operand.vmem [shape: f32[1,4], index: 3, kind: input, shape index: {}]   ;;  %s1483_s4 = inlined_call_operand.vmem [shape: f32[3,4,4], index: 4, kind: input, shape index: {}]   ;;  %s1484_s5 = inlined_call_operand.vmem [shape: f32[1,4], index: 5, kind: input, shape index: {}]   ;;  %s1485_s6 = inlined_call_operand.vmem [shape: f32[1,4], index: 6, kind: input, shape index: {}]   ;;  %s1486_s7 = inlined_call_operand.vmem [shape: f32[4,16], index: 7, kind: input, shape index: {}]   ;;  %s1487_s8 = inlined_call_operand.vmem [shape: f32[1,16], index: 8, kind: input, shape index: {}]   ;;  %s1488_s9 = inlined_call_operand.vmem [shape: f32[1,16], index: 9, kind: input, shape index: {}]   ;;  %s1489_s10 = inlined_call_operand.hbm [shape: f32[2,16,16], index: 10, kind: output, shape index: {}]  }
   0x1   :  { %17 = vsyncpa [#allocation3 + $0x1], 0 }
   0x2   :  { %18 = vsyncpa [#allocation4], 0 }
   0x3   :  { %20 = vsyncpa [#allocation4 + $0x1], 0  ;;  %s1257_s13 = smov 0   ;;  %s1259_s14 = smov 0  }
   0x4   :  { %s1261_s15 = smov 0   ;;  %s1263_s16 = smov 0  }
   0x5 LB: > { %1495 = sst [smem:[#allocation8_spill]] %s1190_s15  ;;  %s1278_s17 = sadd.s32 4294967295, %s1194_s16   ;;  %s1194_s16 = sphi %s1263_s16, %s1507_s16   ;;  %s1190_s15 = sphi %s1261_s15, %s1512_s15   ;;  %s1186_s14 = sphi %s1259_s14, %s1511_s14   ;;  %s1182_s13 = sphi %s1257_s13, %s1510_s13  }
   0x6   : > { %s971_s18 = sadd.s32 4294967294, %s1194_s16   ;;  %s1282_s19 = sadd.s32 1, %s1194_s16  }
   0x7   : > { %1496 = sst [smem:[#allocation9_spill]] %s1282_s19  ;;  %s33_s20 = sadd.s32 1, %s1190_s15 }
   0x8   : > { %s30_s21 = ssub.s32 %s1194_s16, %s1282_s19  ;;  %p40_p0 = scmp.ne.s32.totalorder %s1190_s15, %s1186_s14 }
   0x9   : > { %p31_p1 = scmp.eq.s32.totalorder %s30_s21, 0  ;;  %p41_p2 = scmp.eq.s32.totalorder %s1194_s16, 0 }
   0xa   : > { %p46_p3 = scmp.ne.s32.totalorder %s1186_s14, %s1182_s13  ;;  %p47_p4 = scmp.eq.s32.totalorder %s1278_s17, 0 }
   0xb   : > { %s1294_s22 = scalar_select %p31_p1, %s1190_s15, %s33_s20  }
   0xc   : > { %p1296_p5 = por %p41_p2, %p40_p0  ;;  %p1300_p6 = por %p47_p4, %p46_p3 }
   0xd   : > { %1497 = sst [smem:[#allocation10_spill]] %s1294_s22  ;;  %p259_p7 = scmp.eq.s32.totalorder %s1278_s17, 1 }
   0xe   : > { %s1499_s24 = scalar_select %p1300_p6, 1, 0 }
   0xf   : > { %p265_p8 = scmp.eq.s32.totalorder %s971_s18, 1  ;;  %p1064_p10 = scmp.lt.s32.totalorder %s1194_s16, 2 }
  0x10   : > { %p1307_p11 = por %p259_p7, %p40_p0  ;;  %s312_s27 = sand.u32 1, %s1190_s15  }
  0x11   : > { %p1311_p12 = por %p265_p8, %p46_p3  ;;  %s1007_s28 = sshll.u32 %s1194_s16, 8 }
  0x12   : > { %s1500_s25 = scalar_select %p1307_p11, 1, 0 }
  0x13   : > { %s1501_s26 = scalar_select %p1311_p12, 1, 0 }
  0x14   : > { %s974_s29 = sshll.u32 %s312_s27, 4  ;;  %s1320_s12 = scalar_lea.hbm %s1479_s0, %s1007_s28 }
  0x15   : > { %s316_s18 = scalar_lea.vmem [#allocation2], %s974_s29  ;;  %p1324_p13 = pnand %p1064_p10, %p1296_p5 }
  0x16   : > { %s323_s20 = sshll.u32 %s316_s18, 4  ;;  %s1330_s22 = scalar_lea.sflag [#allocation3], %s312_s27  ;;  %s1328_s20 = int_to_ptr.vmem [resolvable:$true] %s323_s20 }
  0x17   : > { %s1102_s15 = scalar_lea.hbm %s1320_s12, 256  ;;  %p1104_p1 = pneg %p1324_p13 }
  0x18   : > { %p1103_p0 = scmp.ne.s32.totalorder %s1320_s12, %s1102_s15  ;;  %s1107_s29 = scalar_lea.hbm %s1479_s0, 512 }
  0x19   : > { %p1108_p4 = scmp.lt.s32.totalorder %s1320_s12, %s1479_s0  ;;  %p1109_p5 = scmp.lt.s32.totalorder %s1107_s29, %s1102_s15 }
  0x1a   : > { %p1105_p2 = pnand %p1104_p1, %p1103_p0 }
  0x1b   : > { %p1110_p7 = por %p1109_p5, %p1108_p4 }
  0x1c   : > { %p1106_p3 = pneg %p1105_p2 }
  0x1e   : > { %p1111_p8 = pnand %p1110_p7, %p1106_p3 }
  0x20   : > { %1114 = shalt.err (!%p1111_p8)
}
  0x21   : > { %s1115_s27 = scalar_lea.vmem %s1328_s20, 256  ;;  %s1196_s18 = smov [#allocation2]  }
  0x22   : > { %p1116_p10 = scmp.ne.s32.totalorder %s1328_s20, %s1115_s27  ;;  %s1120_s19 = sshll.u32 %s1196_s18, 4  ;;  %s1121_s19 = int_to_ptr.vmem [resolvable:$false] %s1120_s19 }
  0x23   : > { %s1122_s28 = scalar_lea.vmem %s1121_s19, 512  ;;  %p1123_p2 = scmp.lt.s32.totalorder %s1328_s20, %s1121_s19 }
  0x24   : > { %p1118_p9 = pnand %p1116_p10, %p1104_p1  ;;  %p1124_p12 = scmp.lt.s32.totalorder %s1122_s28, %s1115_s27 }
  0x26   : > { %p1119_p0 = pneg %p1118_p9  ;;  %p1125_p11 = por %p1124_p12, %p1123_p2 }
  0x28   : > { %p1126_p6 = pnand %p1125_p11, %p1119_p0 }
  0x2a   : > { %1129 = shalt.err (!%p1126_p6)
}
  0x2b   : > { %s1197_s15 = smov 128   ;;  %s1198_s30 = smov 8  }
  0x2c   : > { %1059 = dma.hbm_to_vmem [thread:$0]  (!%p1324_p13), %s1320_s12, 256, %s1328_s20, %s1330_s22, %s1197_s15, %s1197_s15, %s1198_s30  }
  0x2d   : > { %p977_p9 = scmp.ge.s32.totalorder %s1194_s16, 1  ;;  %p331_p1 = scmp.lt.s32.totalorder %s1194_s16, 3 }
  0x2f   : > { %p332_p3 = pnand %p977_p9, %p331_p1 }
  0x30   : > { %s1354_s19 = sand.u32 (!%p332_p3), 1, %s1186_s14   ;;  %p1503_p6 = scmp.ne.s32.totalorder (!%p332_p3), %s1499_s24, 0 }
  0x31   : > { %335 = sbr.rel (%p332_p3) target bundleno = 689 (0x2b1), region = 60  ;;  %s978_s29 = sshll.u32 (!%p332_p3), %s1354_s19, 4 }
  0x32   : > { %s338_s23 = scalar_lea.sflag (!%p332_p3), [#allocation3], %s1354_s19  ;;  %s341_s11 = scalar_lea.vmem (!%p332_p3), [#allocation2], %s978_s29 }
  0x36   : > { %1173 = dma.done.wait (%p1503_p6), %s338_s23, 256  }
  0x37   : > { %1175 = vsyncadd (%p1503_p6), %s338_s23, 4294967040  ;;  %vm382_vm0 = vcmask 130048   ;;  %v381_v0 = vld [vmem:[%s1480_s1 + $0x8] sm:$0xff]  ;;  %v380_v1 = vld [vmem:[%s1480_s1] sm:$0xff]  ;;  %vm506_vm1 = vcmask 1043456   ;;  %vm501_vm2 = vcmask 31744  }
  0x38   : > { %v1370_v2 = vld [vmem:[%s341_s11] sm:$0xff]  ;;  %1025 = vmatprep.subr.mxu0 %v381_v0  ;;  %v1374_v3 = vld [vmem:[%s341_s11 + $0x8] sm:$0xff]  ;;  %vm486_vm3 = vcmask 1040384   ;;  %vm492_vm4 = vcmask 1046528   ;;  %s1008_s22 = sshll.u32 %s1278_s17, 8  ;;  %s377_s12 = scalar_lea.vmem [#allocation5], %s978_s29 }
  0x39   : > { %1029 = vmatprep.mubr.msk.f32.mxu0 %vm382_vm0, %v1370_v2  ;;  %1026 = vmatpush3.msra.mxu0 %v381_v0  ;;  %v984_v4 = vld [vmem:[%s1483_s4 + $0x4] sm:$0xf]  ;;  %v498_v5 = vld [vmem:[%s1483_s4] sm:$0xf]  ;;  %v991_v6 = vld [vmem:[%s1483_s4 + $0x8] sm:$0xf]  ;;  %s1432_s27 = scalar_lea.hbm %s1489_s10, %s1008_s22 }
  0x3a   : > { %1027 = vmatprep.subr.mxu0 %v380_v1  ;;  %1032 = vmatprep.subr.msk.mxu1 %vm506_vm1, %v984_v4  ;;  %v982_v7 = vld [vmem:[%s1481_s2] ss:$0 sm:$0xff]  ;;  %s898_s20 = sshll.u32 %s377_s12, 4  ;;  %s885_s17 = scalar_lea.sflag [#allocation4], %s1354_s19  ;;  %s1434_s20 = int_to_ptr.vmem [resolvable:$true] %s898_s20 }
  0x3b   : > { %1028 = vmatpush3.msra.mxu0 %v380_v1  ;;  %1033 = vmatpush3.msk.msra.mxu1 %vm506_vm1, %v984_v4  ;;  %v983_v9 = vld [vmem:[%s1482_s3] ss:$0 sm:$0xff]  ;;  %s1130_s29 = scalar_lea.vmem %s1434_s20, 256  ;;  %p1504_p12 = scmp.ne.s32.totalorder %s1500_s25, 0 }
  0x3c   : > { %1030 = vmatmul.mubr.msk.f32.vlgmr.msra.gmra.mxu0 %vm382_vm0, %v1374_v3  ;;  %1037 = vmatprep.subr.msk.mxu1 %vm506_vm1, %v498_v5  ;;  %v775_v25 = vld [vmem:[%s1486_s7] sm:$0xf]  ;;  %p1131_p11 = scmp.ne.s32.totalorder %s1434_s20, %s1130_s29  ;;  %s1199_s18 = smov [#allocation5]  }
  0x3d   : > { %1042 = vmatprep.subr.msk.mxu0 %vm506_vm1, %v991_v6  ;;  %v995_v31 = vld [vmem:[%s1484_s5] ss:$0 sm:$0xff]  ;;  %s1134_s28 = sshll.u32 %s1199_s18, 4  ;;  %s1135_s28 = int_to_ptr.vmem [resolvable:$false] %s1134_s28 }
  0x3e   : > { %1043 = vmatpush3.msk.msra.mxu0 %vm506_vm1, %v991_v6  ;;  %v996_v37 = vld [vmem:[%s1485_s6] ss:$0 sm:$0xff]  ;;  %p1132_p13 = pnand %p1131_p11, %p1504_p12  ;;  %s1136_s15 = scalar_lea.vmem %s1135_s28, 512 }
  0x3f   : > { %v1000_v44 = vld [vmem:[%s1487_s8] ss:$0 sm:$0xff]  ;;  %p1137_p5 = scmp.lt.s32.totalorder %s1434_s20, %s1135_s28  ;;  %p1138_p7 = scmp.lt.s32.totalorder %s1136_s15, %s1130_s29 }
  0x40   : > { %v1001_v46 = vld [vmem:[%s1488_s9] ss:$0 sm:$0xff]  ;;  %p1133_p4 = pneg %p1132_p13 }
  0x41   : > { %p1139_p8 = por %p1138_p7, %p1137_p5 }
  0x43   : > { %p1140_p10 = pnand %p1139_p8, %p1133_p4 }
  0xfc   : > { %v1031_v8 = vpop.f32.mrf.mxu0 }
  0xfd   : > { %v472_v10 = vmul.f32 %v1031_v8, %v982_v7 }
  0xfe   : > { %v455_v11 = vpop.f32.mrf.mxu0 }
  0xff   : > { %v481_v12 = vadd.f32 %v983_v9, %v472_v10  ;;  %v471_v13 = vmul.f32 %v982_v7, %v455_v11 }
 0x101   : > { %v483_v14 = vmax.f32 %v481_v12, 0.0  ;;  %v480_v15 = vadd.f32 %v983_v9, %v471_v13 }
 0x103   : > { %v482_v16 = vmax.f32 %v480_v15, 0.0  ;;  %v494_v17 = vrot.slane %v483_v14, 1  ;;  %v488_v20 = vrot.slane %v483_v14, 7 }
 0x105   : > { %v493_v18 = vrot.slane %v482_v16, 1  ;;  %1034 = vmatprep.mubr.msk.f32.mxu1 %vm501_vm2, %v482_v16  ;;  %v487_v19 = vrot.slane %v482_v16, 7  ;;  %v497_v23 = vsel %vm492_vm4, %v494_v17, 0.0 }
 0x106   : > { %1035 = vmatmul.mubr.msk.f32.vlgmr.msra.gmra.mxu1 %vm501_vm2, %v483_v14 }
 0x107   : > { %1038 = vmatpush3.msk.msra.mxu1 %vm506_vm1, %v498_v5  ;;  %v491_v21 = vsel %vm486_vm3, 0.0, %v487_v19  ;;  %v495_v22 = vsel %vm492_vm4, %v493_v18, %v494_v17  ;;  %v489_v24 = vsel %vm486_vm3, %v487_v19, %v488_v20 }
 0x108   : > { %1039 = vmatprep.mubr.msk.f32.mxu1 %vm501_vm2, %v491_v21  ;;  %1044 = vmatprep.mubr.msk.f32.mxu0 %vm501_vm2, %v495_v22 }
 0x109   : > { %1045 = vmatmul.mubr.msk.f32.vlgmr.msra.gmra.mxu0 %vm501_vm2, %v497_v23  ;;  %1047 = vmatprep.subr.msk.mxu1 %vm506_vm1, %v775_v25 }
 0x10a   : > { %1040 = vmatmul.mubr.msk.f32.vlgmr.msra.gmra.mxu1 %vm501_vm2, %v489_v24 }
 0x10b   : > { %1048 = vmatpush3.msk.msra.mxu1 %vm506_vm1, %v775_v25 }
 0x1c6   : > { %v1036_v26 = vpop.f32.mrf.mxu1 }
 0x1c8   : > { %v576_v27 = vpop.f32.mrf.mxu1 }
 0x1c9   : > { %v1046_v28 = vpop.f32.mrf.mxu0 }
 0x1ca   : > { %v1041_v29 = vpop.f32.mrf.mxu1 }
 0x1cb   : > { %v665_v30 = vadd.f32 %v1041_v29, %v1036_v26  ;;  %v744_v35 = vpop.f32.mrf.mxu0 }
 0x1cc   : > { %v659_v32 = vpop.f32.mrf.mxu1 }
 0x1cd   : > { %v754_v33 = vadd.f32 %v1046_v28, %v665_v30  ;;  %v660_v34 = vadd.f32 %v659_v32, %v576_v27 }
 0x1cf   : > { %v763_v36 = vmul.f32 %v995_v31, %v754_v33  ;;  %v753_v38 = vadd.f32 %v744_v35, %v660_v34 }
 0x1d1   : > { %v762_v39 = vmul.f32 %v995_v31, %v753_v38  ;;  %v772_v40 = vadd.f32 %v996_v37, %v763_v36 }
 0x1d3   : > { %v771_v41 = vadd.f32 %v996_v37, %v762_v39  ;;  %v774_v43 = vmax.f32 %v772_v40, 0.0 }
 0x1d5   : > { %v773_v42 = vmax.f32 %v771_v41, 0.0 }
 0x1d7   : > { %1049 = vmatprep.mubr.msk.f32.mxu1 %vm501_vm2, %v773_v42 }
 0x1d8   : > { %1050 = vmatmul.mubr.msk.f32.vlgmr.msra.gmra.mxu1 %vm501_vm2, %v774_v43 }
 0x298   : > { %v1051_v45 = vpop.f32.mrf.mxu1 }
 0x299   : > { %v868_v47 = vmul.f32 %v1051_v45, %v1000_v44 }
 0x29a   : > { %v851_v48 = vpop.f32.mrf.mxu1 }
 0x29b   : > { %v877_v49 = vadd.f32 %v1001_v46, %v868_v47  ;;  %v867_v50 = vmul.f32 %v1000_v44, %v851_v48 }
 0x29d   : > { %v879_v51 = vadd.f32 %v877_v49, %v1374_v3  ;;  %v876_v52 = vadd.f32 %v1001_v46, %v867_v50 }
 0x29f   : > { %v881_v53 = vmax.f32 %v879_v51, 0.0  ;;  %v878_v54 = vadd.f32 %v876_v52, %v1370_v2 }
 0x2a1   : > { %883 = vst.msk [vmem:[%s377_s12 + $0x8] sm:$0xff] %vm382_vm0, %v881_v53  ;;  %v880_v55 = vmax.f32 %v878_v54, 0.0 }
 0x2a3   : > { %882 = vst.msk [vmem:[%s377_s12] sm:$0xff] %vm382_vm0, %v880_v55 }
 0x2a4   : > { %1143 = shalt.err (!%p1140_p10)
}
 0x2a5   : > { %s1144_s30 = scalar_lea.hbm %s1432_s27, 256  ;;  %s1148_s22 = scalar_lea.hbm %s1489_s10, 512 }
 0x2a6   : > { %p1145_p0 = scmp.ne.s32.totalorder %s1432_s27, %s1144_s30  ;;  %p1149_p1 = scmp.lt.s32.totalorder %s1432_s27, %s1489_s10 }
 0x2a7   : > { %p1150_p3 = scmp.lt.s32.totalorder %s1148_s22, %s1144_s30 }
 0x2a8   : > { %p1146_p2 = pnand %p1145_p0, %p1504_p12 }
 0x2a9   : > { %p1151_p6 = por %p1150_p3, %p1149_p1 }
 0x2aa   : > { %p1147_p9 = pneg %p1146_p2 }
 0x2ac   : > { %p1152_p11 = pnand %p1151_p6, %p1147_p9 }
 0x2ae   : > { %1155 = shalt.err (!%p1152_p11)
}
 0x2af   : > { %s1200_s24 = smov 128   ;;  %s1201_s29 = smov 8  }
 0x2b0   : > { %1054 = dma.vmem_to_hbm [thread:$0]  (%p1504_p12), %s1434_s20, 256, %s1432_s27, %s885_s17, %s1200_s24, %s1200_s24, %s1201_s29  }
 0x2b1 PF: > { %s913_s18 = sand.u32 1, %s1182_s13   ;;  %p1505_p13 = scmp.ne.s32.totalorder %s1501_s26, 0 }
 0x2b2   : > { %p1506_p4 = scmp.ge.s32.totalorder %s1194_s16, 2  ;;  %s914_s28 = scalar_lea.sflag [#allocation4], %s913_s18 }
 0x2b4   : > { %p1061_p5 = pnand %p1506_p4, %p1505_p13 }
 0x2b6   : > { %p1062_p7 = pneg %p1061_p5 }
 0x2b8   : > { %1177 = dma.done.wait (%p1062_p7), %s914_s28, 256  }
 0x2b9   : > { %1179 = vsyncadd (%p1062_p7), %s914_s28, 4294967040  ;;  %s1507_s16 = sld [smem:[#allocation9_spill]]  ;;  %s1510_s13 = smov %s1186_s14 }
 0x2ba   : > { %s1508_s15 = sld [smem:[#allocation8_spill]] }
 0x2bb   : > { %s1509_s30 = sld [smem:[#allocation10_spill]] }
 0x2bf   : > { %p23_p8 = scmp.ge.s32.totalorder %s1507_s16, 4  }
 0x2c0   : > { %s1511_s14 = smov %s1508_s15 }
 0x2c1   : > { %s1512_s15 = smov %s1509_s30  ;;  %25 = sbr.rel (!%p23_p8) target bundleno = 5 (0x5), region = 107 }
 0x2c6   :  { %919 = vsyncpa [#allocation3], 1 }
 0x2c7   :  { %921 = vsyncpa [#allocation3 + $0x1], 1 }
 0x2c8   :  { %922 = vsyncpa [#allocation4], 1 }
 0x2c9   :  { %924 = vsyncpa [#allocation4 + $0x1], 1 }

</bundles_post_ra>
